<compile_context>
chip_gen: v6e
topology: v6e:2x2x1
jax: 0.10.0
libtpu: 0.0.40
codegen_flags: <defaults>
</compile_context>

<pallas_src>
import functools

import jax
import jax.numpy as jnp
from jax.experimental import pallas as pl
from jax.experimental.pallas import tpu as pltpu


def _softplus(x):
    # single-branch stable softplus: one exp + one log1p per element, no overflow branch
    return jnp.maximum(x, 0.0) + jnp.log1p(jnp.exp(-jnp.abs(x)))


def _round_up(n, m):
    return ((n + m - 1) // m) * m


def _gmvae_fwd_kernel(x_ref, wl_ref, bl_ref, wr_ref, br_ref, wd_ref, bd_ref,
                      eps_ref, logits_ref, packed_ref,
                      *, sigma_min, raw_sigma_bias):
    f32 = jnp.float32
    x = x_ref[...]                                                    # (TB, D)

    # ---- encoder q(z|x): two lane-aligned matmuls (no mid-vreg lane split) ----
    loc = jnp.dot(x, wl_ref[...], preferred_element_type=f32) + bl_ref[...]   # (TB, L)
    raw = jnp.dot(x, wr_ref[...], preferred_element_type=f32) + br_ref[...]   # (TB, L)
    scale = jnp.maximum(_softplus(raw + raw_sigma_bias), sigma_min)           # (TB, L)

    # ---- reparameterized sample ----
    z = loc + scale * eps_ref[...].astype(f32)                                # (TB, L)

    # ---- decoder p(x|z): Bernoulli logits ----
    logits = jnp.dot(z.astype(wd_ref.dtype), wd_ref[...],
                     preferred_element_type=f32) + bd_ref[...]                # (TB, D)
    logits_ref[...] = logits.astype(logits_ref.dtype)

    # ---- pack the three small (TB, L) outputs into one lane-dense slab ----
    pieces = [loc, scale, z]
    pad_w = packed_ref.shape[-1] - 3 * loc.shape[-1]
    if pad_w > 0:
        pieces.append(jnp.zeros((loc.shape[0], pad_w), f32))
    packed_ref[...] = jnp.concatenate(pieces, axis=-1).astype(packed_ref.dtype)


def vae_gmp_forward(x, params, eps, *, sigma_min=0.001, raw_sigma_bias=0.25,
                    compute_dtype=jnp.float32):
    """Fused VAEGMPNet forward pass.

    Returns a dict mirroring the PyTorch forward output:
      p_x_given_z: {'logits', 'mean'}   (Bernoulli likelihood parameters)
      q_z_given_x: {'loc', 'scale'}
      p_z:         {'loc', 'scale'}     (standard normal prior, n_mix_components=1)
      z:           reparameterized sample
    """
    B, D = x.shape
    L = params["w_enc"].shape[1] // 2

    # Wrapper-side layout plumbing: split encoder weights so the kernel never
    # slices along the lane axis at a non-128 boundary.
    w_loc = params["w_enc"][:, :L].astype(compute_dtype)
    w_raw = params["w_enc"][:, L:].astype(compute_dtype)
    b_loc = params["b_enc"][:L].reshape(1, L).astype(jnp.float32)
    b_raw = params["b_enc"][L:].reshape(1, L).astype(jnp.float32)
    w_dec = params["w_dec"].astype(compute_dtype)
    b_dec = params["b_dec"].reshape(1, D).astype(jnp.float32)

    xc = x.astype(compute_dtype)
    epsc = eps.astype(compute_dtype)

    # Batch tiling: small batches -> one sublane-aligned block; large batches ->
    # 128-row tiles so BlockSpec double-buffers x/eps/outputs while the weights
    # stay resident, and the "parallel" axis can shard across TensorCores (v7x).
    TB = _round_up(B, 8) if B <= 256 else 128
    B_pad = _round_up(B, TB)
    if B_pad != B:
        xc = jnp.pad(xc, ((0, B_pad - B), (0, 0)))
        epsc = jnp.pad(epsc, ((0, B_pad - B), (0, 0)))

    P = max(128, _round_up(3 * L, 128))        # lane-dense packed output width
    grid = (B_pad // TB,)

    kernel = functools.partial(
        _gmvae_fwd_kernel,
        sigma_min=float(sigma_min),
        raw_sigma_bias=float(raw_sigma_bias),
    )

    def resident(arr):
        # full-array block; same block index every grid step -> stays in VMEM
        return pl.BlockSpec(arr.shape, lambda i: (0, 0))

    logits, packed = pl.pallas_call(
        kernel,
        grid=grid,
        in_specs=[
            pl.BlockSpec((TB, D), lambda i: (i, 0)),      # x  (batch-tiled)
            resident(w_loc), resident(b_loc),
            resident(w_raw), resident(b_raw),
            resident(w_dec), resident(b_dec),
            pl.BlockSpec((TB, L), lambda i: (i, 0)),      # eps (batch-tiled)
        ],
        out_specs=(
            pl.BlockSpec((TB, D), lambda i: (i, 0)),      # logits
            pl.BlockSpec((TB, P), lambda i: (i, 0)),      # packed [loc|scale|z|pad]
        ),
        out_shape=(
            jax.ShapeDtypeStruct((B_pad, D), jnp.float32),
            jax.ShapeDtypeStruct((B_pad, P), jnp.float32),
        ),
        compiler_params=pltpu.CompilerParams(
            dimension_semantics=("parallel",)),
    )(xc, w_loc, b_loc, w_raw, b_raw, w_dec, b_dec, epsc)

    logits = logits[:B]
    loc = packed[:B, 0 * L:1 * L]
    scale = packed[:B, 1 * L:2 * L]
    z = packed[:B, 2 * L:3 * L]

    # Bernoulli mean computed wrapper-side (one cheap XLA op) instead of a second
    # full-size kernel output.
    probs = jax.nn.sigmoid(logits)

    # Prior p(z) = N(0, 1) for n_mix_components == 1 (constant; no kernel work).
    # TODO(synk): mixture prior branch (n_mix_components > 1) only builds
    # distribution parameters (Categorical + Normal components); no tensor
    # compute on x, so it is not part of the kernel.
    p_z = {"loc": jnp.zeros((L,), jnp.float32),
           "scale": jnp.ones((L,), jnp.float32)}

    return {
        "p_x_given_z": {"logits": logits, "mean": probs},
        "q_z_given_x": {"loc": loc, "scale": scale},
        "p_z": p_z,
        "z": z,
    }


def init_params(key, input_dim, latent_dim, gen_bias_init=0.0):
    """Deterministic parameter init (PyTorch-Linear-style uniform fan-in)."""
    k1, k2, k3 = jax.random.split(key, 3)
    bound_e = 1.0 / jnp.sqrt(input_dim)
    bound_d = 1.0 / jnp.sqrt(latent_dim)
    return {
        "w_enc": jax.random.uniform(k1, (input_dim, 2 * latent_dim),
                                    jnp.float32, -bound_e, bound_e),
        "b_enc": jax.random.uniform(k2, (2 * latent_dim,),
                                    jnp.float32, -bound_e, bound_e),
        "w_dec": jax.random.uniform(k3, (latent_dim, input_dim),
                                    jnp.float32, -bound_d, bound_d),
        "b_dec": jnp.full((input_dim,), gen_bias_init, jnp.float32),
    }


def _reference_forward(x, params, eps, sigma_min=0.001, raw_sigma_bias=0.25):
    L = params["w_enc"].shape[1] // 2
    enc = x @ params["w_enc"] + params["b_enc"]
    loc, raw = enc[:, :L], enc[:, L:]
    scale = jnp.maximum(jax.nn.softplus(raw + raw_sigma_bias), sigma_min)
    z = loc + scale * eps
    logits = z @ params["w_dec"] + params["b_dec"]
    return logits, jax.nn.sigmoid(logits), loc, scale, z


if __name__ == "__main__":
    key = jax.random.PRNGKey(0)
    k_x, k_eps, k_p = jax.random.split(key, 3)

    batch, input_dim, latent_dim = 8, 256, 32

    x = jax.random.normal(k_x, (batch, input_dim), jnp.float32)
    eps = jax.random.normal(k_eps, (batch, latent_dim), jnp.float32)
    params = init_params(k_p, input_dim, latent_dim, gen_bias_init=0.0)

    out = vae_gmp_forward(x, params, eps)
    out = jax.block_until_ready(out)

    # correctness check against a pure-JAX reference of the same math
    ref_logits, ref_probs, ref_loc, ref_scale, ref_z = _reference_forward(x, params, eps)
    assert jnp.allclose(out["p_x_given_z"]["logits"], ref_logits, atol=1e-4, rtol=1e-4)
    assert jnp.allclose(out["p_x_given_z"]["mean"], ref_probs, atol=1e-5, rtol=1e-5)
    assert jnp.allclose(out["q_z_given_x"]["loc"], ref_loc, atol=1e-5, rtol=1e-5)
    assert jnp.allclose(out["q_z_given_x"]["scale"], ref_scale, atol=1e-5, rtol=1e-5)
    assert jnp.allclose(out["z"], ref_z, atol=1e-5, rtol=1e-5)

    print("KERNEL_OK")
</pallas_src>

<mosaic_0001>
module attributes {stable_mosaic.version = 11 : i64} {
  func.func @_gmvae_fwd_kernel(%arg0: i32, %arg1: memref<8x256xf32, #tpu.memory_space<vmem>>, %arg2: memref<256x32xf32, #tpu.memory_space<vmem>>, %arg3: memref<1x32xf32, #tpu.memory_space<vmem>>, %arg4: memref<256x32xf32, #tpu.memory_space<vmem>>, %arg5: memref<1x32xf32, #tpu.memory_space<vmem>>, %arg6: memref<32x256xf32, #tpu.memory_space<vmem>>, %arg7: memref<1x256xf32, #tpu.memory_space<vmem>>, %arg8: memref<8x32xf32, #tpu.memory_space<vmem>>, %arg9: memref<8x256xf32, #tpu.memory_space<vmem>>, %arg10: memref<8x128xf32, #tpu.memory_space<vmem>>) attributes {dimension_semantics = [#tpu.dimension_semantics<parallel>], iteration_bounds = array<i64: 1>, scalar_prefetch = 0 : i64, scratch_operands = 0 : i64, tpu.core_type = #tpu.core_type<tc>, window_params = [{transform_indices = @transform_0, window_bounds = array<i64: 8, 256>}, {pipeline_mode = #tpu.pipeline_mode<synchronous>, transform_indices = @transform_1, window_bounds = array<i64: 256, 32>}, {pipeline_mode = #tpu.pipeline_mode<synchronous>, transform_indices = @transform_2, window_bounds = array<i64: 1, 32>}, {pipeline_mode = #tpu.pipeline_mode<synchronous>, transform_indices = @transform_3, window_bounds = array<i64: 256, 32>}, {pipeline_mode = #tpu.pipeline_mode<synchronous>, transform_indices = @transform_4, window_bounds = array<i64: 1, 32>}, {pipeline_mode = #tpu.pipeline_mode<synchronous>, transform_indices = @transform_5, window_bounds = array<i64: 32, 256>}, {pipeline_mode = #tpu.pipeline_mode<synchronous>, transform_indices = @transform_6, window_bounds = array<i64: 1, 256>}, {transform_indices = @transform_7, window_bounds = array<i64: 8, 32>}, {transform_indices = @transform_8, window_bounds = array<i64: 8, 256>}, {transform_indices = @transform_9, window_bounds = array<i64: 8, 128>}]} {
    %c0 = arith.constant 0 : index
    %c0_0 = arith.constant 0 : index
    %0 = vector.load %arg1[%c0, %c0_0] : memref<8x256xf32, #tpu.memory_space<vmem>>, vector<8x256xf32>
    %c0_1 = arith.constant 0 : index
    %c0_2 = arith.constant 0 : index
    %1 = vector.load %arg2[%c0_1, %c0_2] : memref<256x32xf32, #tpu.memory_space<vmem>>, vector<256x32xf32>
    %cst = arith.constant dense<0.000000e+00> : vector<8x32xf32>
    %2 = tpu.matmul %0, %1, %cst {dimension_numbers = #tpu.dot_dimension_numbers<[1], [0], [0], [1], [0, 0, 1, 1], [], []>} : vector<8x256xf32>, vector<256x32xf32>, vector<8x32xf32> -> vector<8x32xf32>
    %c0_3 = arith.constant 0 : index
    %c0_4 = arith.constant 0 : index
    %3 = vector.load %arg3[%c0_3, %c0_4] : memref<1x32xf32, #tpu.memory_space<vmem>>, vector<1x32xf32>
    %4 = vector.broadcast %3 : vector<1x32xf32> to vector<8x32xf32>
    %5 = arith.addf %2, %4 : vector<8x32xf32>
    %c0_5 = arith.constant 0 : index
    %c0_6 = arith.constant 0 : index
    %6 = vector.load %arg4[%c0_5, %c0_6] : memref<256x32xf32, #tpu.memory_space<vmem>>, vector<256x32xf32>
    %cst_7 = arith.constant dense<0.000000e+00> : vector<8x32xf32>
    %7 = tpu.matmul %0, %6, %cst_7 {dimension_numbers = #tpu.dot_dimension_numbers<[1], [0], [0], [1], [0, 0, 1, 1], [], []>} : vector<8x256xf32>, vector<256x32xf32>, vector<8x32xf32> -> vector<8x32xf32>
    %c0_8 = arith.constant 0 : index
    %c0_9 = arith.constant 0 : index
    %8 = vector.load %arg5[%c0_8, %c0_9] : memref<1x32xf32, #tpu.memory_space<vmem>>, vector<1x32xf32>
    %9 = vector.broadcast %8 : vector<1x32xf32> to vector<8x32xf32>
    %10 = arith.addf %7, %9 : vector<8x32xf32>
    %cst_10 = arith.constant 2.500000e-01 : f32
    %11 = vector.broadcast %cst_10 : f32 to vector<8x32xf32>
    %12 = arith.addf %10, %11 : vector<8x32xf32>
    %cst_11 = arith.constant 0.000000e+00 : f32
    %13 = vector.broadcast %cst_11 : f32 to vector<8x32xf32>
    %14 = arith.maximumf %12, %13 : vector<8x32xf32>
    %15 = math.absf %12 : vector<8x32xf32>
    %cst_12 = arith.constant 0.000000e+00 : f32
    %16 = vector.broadcast %cst_12 : f32 to vector<8x32xf32>
    %17 = arith.subf %16, %15 : vector<8x32xf32>
    %18 = math.exp %17 : vector<8x32xf32>
    %19 = math.log1p %18 : vector<8x32xf32>
    %20 = arith.addf %14, %19 : vector<8x32xf32>
    %cst_13 = arith.constant 1.000000e-03 : f32
    %21 = vector.broadcast %cst_13 : f32 to vector<8x32xf32>
    %22 = arith.maximumf %20, %21 : vector<8x32xf32>
    %c0_14 = arith.constant 0 : index
    %c0_15 = arith.constant 0 : index
    %23 = vector.load %arg8[%c0_14, %c0_15] : memref<8x32xf32, #tpu.memory_space<vmem>>, vector<8x32xf32>
    %24 = arith.mulf %22, %23 : vector<8x32xf32>
    %25 = arith.addf %5, %24 : vector<8x32xf32>
    %c0_16 = arith.constant 0 : index
    %c0_17 = arith.constant 0 : index
    %26 = vector.load %arg6[%c0_16, %c0_17] : memref<32x256xf32, #tpu.memory_space<vmem>>, vector<32x256xf32>
    %cst_18 = arith.constant dense<0.000000e+00> : vector<8x256xf32>
    %27 = tpu.matmul %25, %26, %cst_18 {dimension_numbers = #tpu.dot_dimension_numbers<[1], [0], [0], [1], [0, 0, 1, 1], [], []>} : vector<8x32xf32>, vector<32x256xf32>, vector<8x256xf32> -> vector<8x256xf32>
    %c0_19 = arith.constant 0 : index
    %c0_20 = arith.constant 0 : index
    %28 = vector.load %arg7[%c0_19, %c0_20] : memref<1x256xf32, #tpu.memory_space<vmem>>, vector<1x256xf32>
    %29 = vector.broadcast %28 : vector<1x256xf32> to vector<8x256xf32>
    %30 = arith.addf %27, %29 : vector<8x256xf32>
    %c0_21 = arith.constant 0 : index
    %c0_22 = arith.constant 0 : index
    %31 = vector.load %arg9[%c0_21, %c0_22] : memref<8x256xf32, #tpu.memory_space<vmem>>, vector<8x256xf32>
    tpu.vector_store %arg9[%c0_21, %c0_22], %30 {strides = array<i32>} : memref<8x256xf32, #tpu.memory_space<vmem>>, vector<8x256xf32>,
    %cst_23 = arith.constant 0.000000e+00 : f32
    %32 = vector.broadcast %cst_23 : f32 to vector<8x32xf32>
    %33 = tpu.concatenate %5, %22, %25, %32 in 1 : vector<8x32xf32>, vector<8x32xf32>, vector<8x32xf32>, vector<8x32xf32> -> vector<8x128xf32>
    %c0_24 = arith.constant 0 : index
    %c0_25 = arith.constant 0 : index
    %34 = vector.load %arg10[%c0_24, %c0_25] : memref<8x128xf32, #tpu.memory_space<vmem>>, vector<8x128xf32>
    tpu.vector_store %arg10[%c0_24, %c0_25], %33 {strides = array<i32>} : memref<8x128xf32, #tpu.memory_space<vmem>>, vector<8x128xf32>,
    return
  }
  func.func @transform_0(%arg0: i32) -> (i32, i32) {
    %c0_i32 = arith.constant 0 : i32
    %c0_i32_0 = arith.constant 0 : i32
    return %arg0, %c0_i32 : i32, i32
  }
  func.func @transform_1(%arg0: i32) -> (i32, i32) {
    %c0_i32 = arith.constant 0 : i32
    %c0_i32_0 = arith.constant 0 : i32
    %c0_i32_1 = arith.constant 0 : i32
    return %c0_i32, %c0_i32_0 : i32, i32
  }
  func.func @transform_2(%arg0: i32) -> (i32, i32) {
    %c0_i32 = arith.constant 0 : i32
    %c0_i32_0 = arith.constant 0 : i32
    %c0_i32_1 = arith.constant 0 : i32
    return %c0_i32, %c0_i32_0 : i32, i32
  }
  func.func @transform_3(%arg0: i32) -> (i32, i32) {
    %c0_i32 = arith.constant 0 : i32
    %c0_i32_0 = arith.constant 0 : i32
    %c0_i32_1 = arith.constant 0 : i32
    return %c0_i32, %c0_i32_0 : i32, i32
  }
  func.func @transform_4(%arg0: i32) -> (i32, i32) {
    %c0_i32 = arith.constant 0 : i32
    %c0_i32_0 = arith.constant 0 : i32
    %c0_i32_1 = arith.constant 0 : i32
    return %c0_i32, %c0_i32_0 : i32, i32
  }
  func.func @transform_5(%arg0: i32) -> (i32, i32) {
    %c0_i32 = arith.constant 0 : i32
    %c0_i32_0 = arith.constant 0 : i32
    %c0_i32_1 = arith.constant 0 : i32
    return %c0_i32, %c0_i32_0 : i32, i32
  }
  func.func @transform_6(%arg0: i32) -> (i32, i32) {
    %c0_i32 = arith.constant 0 : i32
    %c0_i32_0 = arith.constant 0 : i32
    %c0_i32_1 = arith.constant 0 : i32
    return %c0_i32, %c0_i32_0 : i32, i32
  }
  func.func @transform_7(%arg0: i32) -> (i32, i32) {
    %c0_i32 = arith.constant 0 : i32
    %c0_i32_0 = arith.constant 0 : i32
    return %arg0, %c0_i32 : i32, i32
  }
  func.func @transform_8(%arg0: i32) -> (i32, i32) {
    %c0_i32 = arith.constant 0 : i32
    %c0_i32_0 = arith.constant 0 : i32
    return %arg0, %c0_i32 : i32, i32
  }
  func.func @transform_9(%arg0: i32) -> (i32, i32) {
    %c0_i32 = arith.constant 0 : i32
    %c0_i32_0 = arith.constant 0 : i32
    return %arg0, %c0_i32 : i32, i32
  }
}

</mosaic_0001>

<bundles_post_ra>
// kernel: tpu_custom_call.1
= control target key start
LH: loop header
LB: loop body
LE: loop exit
PB: predicated region body
PF: predicated region fallthrough
CT: control target
= control target key end

     0   :  { %15 = vsyncpa [#allocation3], 0  ;;  %s836_s0 = inlined_call_operand.vmem [shape: f32[8,256], index: 0, kind: input, shape index: {}]   ;;  %s837_s1 = inlined_call_operand.vmem [shape: f32[256,32], index: 1, kind: input, shape index: {}]   ;;  %s838_s2 = inlined_call_operand.vmem [shape: f32[1,32], index: 2, kind: input, shape index: {}]   ;;  %s839_s3 = inlined_call_operand.vmem [shape: f32[256,32], index: 3, kind: input, shape index: {}]   ;;  %s840_s4 = inlined_call_operand.vmem [shape: f32[1,32], index: 4, kind: input, shape index: {}]   ;;  %s841_s5 = inlined_call_operand.vmem [shape: f32[32,256], index: 5, kind: input, shape index: {}]   ;;  %s842_s6 = inlined_call_operand.vmem [shape: f32[1,256], index: 6, kind: input, shape index: {}]   ;;  %s843_s7 = inlined_call_operand.vmem [shape: f32[8,32], index: 7, kind: input, shape index: {}]   ;;  %s844_s8 = inlined_call_operand.hbm [shape: f32[8,256], index: 8, kind: output, shape index: {0}]   ;;  %s845_s9 = inlined_call_operand.hbm [shape: f32[8,128], index: 9, kind: output, shape index: {1}]  }
   0x1   :  { %v175_v0 = vld [vmem:[%s839_s3 + $0xf8] sm:$0xff]  ;;  %v174_v2 = vld [vmem:[%s839_s3 + $0xf0] sm:$0xff]  ;;  %v173_v4 = vld [vmem:[%s839_s3 + $0xe8] sm:$0xff] }
   0x2   :  { %v159_v1 = vld [vmem:[%s839_s3 + $0x78] sm:$0xff]  ;;  %449 = vmatprep.subr.mxu1 %v175_v0  ;;  %v158_v3 = vld [vmem:[%s839_s3 + $0x70] sm:$0xff]  ;;  %v157_v5 = vld [vmem:[%s839_s3 + $0x68] sm:$0xff] }
   0x3   :  { %450 = vmatpush3.msra.mxu1 %v159_v1  ;;  %v172_v6 = vld [vmem:[%s839_s3 + $0xe0] sm:$0xff]  ;;  %v171_v8 = vld [vmem:[%s839_s3 + $0xd8] sm:$0xff]  ;;  %v170_v10 = vld [vmem:[%s839_s3 + $0xd0] sm:$0xff] }
   0x4   :  { %451 = vmatprep.subr.mxu1 %v174_v2  ;;  %v156_v7 = vld [vmem:[%s839_s3 + $0x60] sm:$0xff]  ;;  %v155_v9 = vld [vmem:[%s839_s3 + $0x58] sm:$0xff]  ;;  %v154_v11 = vld [vmem:[%s839_s3 + $0x50] sm:$0xff] }
   0x5   :  { %452 = vmatpush3.msra.mxu1 %v158_v3  ;;  %v169_v12 = vld [vmem:[%s839_s3 + $0xc8] sm:$0xff]  ;;  %v66_v15 = vld [vmem:[%s837_s1 + $0xf8] sm:$0xff]  ;;  %v168_v17 = vld [vmem:[%s839_s3 + $0xc0] sm:$0xff] }
   0x6   :  { %453 = vmatprep.subr.mxu1 %v173_v4  ;;  %v634_v13 = vld [vmem:[%s836_s0 + $0x8] sm:$0xff]  ;;  %v50_v16 = vld [vmem:[%s837_s1 + $0x78] sm:$0xff]  ;;  %414 = vmatprep.subr.mxu0 %v66_v15  ;;  %v65_v18 = vld [vmem:[%s837_s1 + $0xf0] sm:$0xff] }
   0x7   :  { %454 = vmatpush3.msra.mxu1 %v157_v5  ;;  %v153_v14 = vld [vmem:[%s839_s3 + $0x48] sm:$0xff]  ;;  %247 = vmatprep.mubr.f32.mxu1 %v634_v13  ;;  %v49_v19 = vld [vmem:[%s837_s1 + $0x70] sm:$0xff]  ;;  %v152_v20 = vld [vmem:[%s839_s3 + $0x40] sm:$0xff] }
   0x8   :  { %455 = vmatprep.subr.mxu1 %v172_v6  ;;  %415 = vmatpush3.msra.mxu0 %v50_v16  ;;  %v64_v21 = vld [vmem:[%s837_s1 + $0xe8] sm:$0xff]  ;;  %v167_v22 = vld [vmem:[%s839_s3 + $0xb8] sm:$0xff]  ;;  %v63_v25 = vld [vmem:[%s837_s1 + $0xe0] sm:$0xff] }
   0x9   :  { %456 = vmatpush3.msra.mxu1 %v156_v7  ;;  %416 = vmatprep.subr.mxu0 %v65_v18  ;;  %v48_v23 = vld [vmem:[%s837_s1 + $0x68] sm:$0xff]  ;;  %v151_v24 = vld [vmem:[%s839_s3 + $0x38] sm:$0xff]  ;;  %v166_v26 = vld [vmem:[%s839_s3 + $0xb0] sm:$0xff] }
   0xa   :  { %457 = vmatprep.subr.mxu1 %v171_v8  ;;  %417 = vmatpush3.msra.mxu0 %v49_v19  ;;  %v47_v27 = vld [vmem:[%s837_s1 + $0x60] sm:$0xff]  ;;  %v150_v28 = vld [vmem:[%s839_s3 + $0x30] sm:$0xff]  ;;  %v62_v29 = vld [vmem:[%s837_s1 + $0xd8] sm:$0xff] }
   0xb   :  { %458 = vmatpush3.msra.mxu1 %v155_v9  ;;  %418 = vmatprep.subr.mxu0 %v64_v21  ;;  %v165_v30 = vld [vmem:[%s839_s3 + $0xa8] sm:$0xff]  ;;  %v46_v31 = vld [vmem:[%s837_s1 + $0x58] sm:$0xff]  ;;  %v61_v33 = vld [vmem:[%s837_s1 + $0xd0] sm:$0xff] }
   0xc   :  { %459 = vmatprep.subr.mxu1 %v170_v10  ;;  %419 = vmatpush3.msra.mxu0 %v48_v23  ;;  %v149_v32 = vld [vmem:[%s839_s3 + $0x28] sm:$0xff]  ;;  %v164_v34 = vld [vmem:[%s839_s3 + $0xa0] sm:$0xff]  ;;  %v45_v35 = vld [vmem:[%s837_s1 + $0x50] sm:$0xff] }
   0xd   :  { %460 = vmatpush3.msra.mxu1 %v154_v11  ;;  %420 = vmatprep.subr.mxu0 %v63_v25  ;;  %v148_v36 = vld [vmem:[%s839_s3 + $0x20] sm:$0xff]  ;;  %v60_v37 = vld [vmem:[%s837_s1 + $0xc8] sm:$0xff]  ;;  %v163_v38 = vld [vmem:[%s839_s3 + $0x98] sm:$0xff] }
   0xe   :  { %461 = vmatprep.subr.mxu1 %v169_v12  ;;  %421 = vmatpush3.msra.mxu0 %v47_v27  ;;  %v44_v39 = vld [vmem:[%s837_s1 + $0x48] sm:$0xff] }
   0xf   :  { %462 = vmatpush3.msra.mxu1 %v153_v14  ;;  %422 = vmatprep.subr.mxu0 %v62_v29 }
  0x10   :  { %463 = vmatprep.subr.mxu1 %v168_v17  ;;  %423 = vmatpush3.msra.mxu0 %v46_v31 }
  0x11   :  { %464 = vmatpush3.msra.mxu1 %v152_v20  ;;  %424 = vmatprep.subr.mxu0 %v61_v33 }
  0x12   :  { %465 = vmatprep.subr.mxu1 %v167_v22 }
  0x13   :  { %466 = vmatpush3.msra.mxu1 %v151_v24 }
  0x14   :  { %467 = vmatprep.subr.mxu1 %v166_v26 }
  0x15   :  { %468 = vmatpush3.msra.mxu1 %v150_v28 }
  0x16   :  { %469 = vmatprep.subr.mxu1 %v165_v30 }
  0x17   :  { %470 = vmatpush3.msra.mxu1 %v149_v32 }
  0x18   :  { %16 = vsyncpa [#allocation5], 0  ;;  %471 = vmatprep.subr.mxu1 %v164_v34  ;;  %v147_v40 = vld [vmem:[%s839_s3 + $0x18] sm:$0xff]  ;;  %425 = vmatpush3.msra.mxu0 %v45_v35  ;;  %v59_v41 = vld [vmem:[%s837_s1 + $0xc0] sm:$0xff]  ;;  %v537_v10 = vmov 0.0   ;;  %s538_s30 = smov 32  }
  0x19   :  { %472 = vmatpush3.msra.mxu1 %v148_v36  ;;  %v162_v42 = vld [vmem:[%s839_s3 + $0x90] sm:$0xff]  ;;  %426 = vmatprep.subr.mxu0 %v60_v37  ;;  %v43_v43 = vld [vmem:[%s837_s1 + $0x40] sm:$0xff]  ;;  %v58_v45 = vld [vmem:[%s837_s1 + $0xb8] sm:$0xff]  ;;  %vm293_vm1 = vcmask 261120   ;;  %s539_s10 = smov 64   ;;  %vm378_vm2 = vcmask 523264  }
  0x1a   :  { %473 = vmatprep.subr.mxu1 %v163_v38  ;;  %v146_v44 = vld [vmem:[%s839_s3 + $0x10] sm:$0xff]  ;;  %427 = vmatpush3.msra.mxu0 %v44_v39  ;;  %v161_v46 = vld [vmem:[%s839_s3 + $0x88] sm:$0xff]  ;;  %v42_v47 = vld [vmem:[%s837_s1 + $0x38] sm:$0xff]  ;;  %s540_s11 = smov [#allocation4]   ;;  %vm380_vm3 = vcmask 785408  }
  0x1b   :  { %474 = vmatpush3.msra.mxu1 %v147_v40  ;;  %428 = vmatprep.subr.mxu0 %v59_v41  ;;  %v145_v48 = vld [vmem:[%s839_s3 + $0x8] sm:$0xff]  ;;  %v57_v49 = vld [vmem:[%s837_s1 + $0xb0] sm:$0xff]  ;;  %v160_v50 = vld [vmem:[%s839_s3 + $0x80] sm:$0xff]  ;;  %s399_s12 = sshll.u32 %s540_s11, 4  ;;  %s400_s12 = int_to_ptr.vmem [resolvable:$true] %s399_s12 }
  0x1c   :  { %475 = vmatprep.subr.mxu1 %v162_v42  ;;  %429 = vmatpush3.msra.mxu0 %v43_v43  ;;  %v41_v51 = vld [vmem:[%s837_s1 + $0x30] sm:$0xff]  ;;  %v144_v52 = vld [vmem:[%s839_s3] sm:$0xff]  ;;  %v56_v53 = vld [vmem:[%s837_s1 + $0xa8] sm:$0xff]  ;;  %p498_p1 = scmp.lt.s32.totalorder %s400_s12, %s400_s12 }
  0x1d   :  { %476 = vmatpush3.msra.mxu1 %v146_v44  ;;  %430 = vmatprep.subr.mxu0 %v58_v45  ;;  %v33_v54 = vld [vmem:[%s836_s0] sm:$0xff]  ;;  %v40_v55 = vld [vmem:[%s837_s1 + $0x28] sm:$0xff]  ;;  %v54_v58 = vld [vmem:[%s837_s1 + $0x98] sm:$0xff] }
  0x1e   :  { %477 = vmatprep.subr.mxu1 %v161_v46  ;;  %431 = vmatpush3.msra.mxu0 %v42_v47  ;;  %v55_v56 = vld [vmem:[%s837_s1 + $0xa0] sm:$0xff]  ;;  %v38_v59 = vld [vmem:[%s837_s1 + $0x18] sm:$0xff]  ;;  %v53_v60 = vld [vmem:[%s837_s1 + $0x90] sm:$0xff] }
  0x1f   :  { %478 = vmatpush3.msra.mxu1 %v145_v48  ;;  %432 = vmatprep.subr.mxu0 %v57_v49  ;;  %v39_v57 = vld [vmem:[%s837_s1 + $0x20] sm:$0xff]  ;;  %v37_v61 = vld [vmem:[%s837_s1 + $0x10] sm:$0xff]  ;;  %v52_v62 = vld [vmem:[%s837_s1 + $0x88] sm:$0xff] }
  0x20   :  { %479 = vmatprep.subr.mxu1 %v160_v50  ;;  %433 = vmatpush3.msra.mxu0 %v41_v51  ;;  %v36_v63 = vld [vmem:[%s837_s1 + $0x8] sm:$0xff]  ;;  %v51_v0 = vld [vmem:[%s837_s1 + $0x80] sm:$0xff]  ;;  %v280_v2 = vld [vmem:[%s841_s5 + $0x38] sm:$0xff] }
  0x21   :  { %480 = vmatpush3.msra.mxu1 %v144_v52  ;;  %434 = vmatprep.subr.mxu0 %v56_v53  ;;  %v35_v1 = vld [vmem:[%s837_s1] sm:$0xff]  ;;  %v279_v3 = vld [vmem:[%s841_s5 + $0x30] sm:$0xff]  ;;  %v278_v4 = vld [vmem:[%s841_s5 + $0x28] sm:$0xff] }
  0x22   :  { %248 = vmatmul.mubr.f32.vlgmr.msra.gmra.mxu1 %v33_v54  ;;  %435 = vmatpush3.msra.mxu0 %v40_v55  ;;  %v277_v5 = vld [vmem:[%s841_s5 + $0x20] sm:$0xff]  ;;  %v276_v6 = vld [vmem:[%s841_s5 + $0x18] sm:$0xff]  ;;  %v275_v7 = vld [vmem:[%s841_s5 + $0x10] sm:$0xff] }
  0x23   :  { %436 = vmatprep.subr.mxu0 %v55_v56  ;;  %138 = vmatprep.mubr.f32.mxu0 %v634_v13  ;;  %v274_v8 = vld [vmem:[%s841_s5 + $0x8] sm:$0xff]  ;;  %v273_v9 = vld [vmem:[%s841_s5] sm:$0xff] }
  0x24   :  { %437 = vmatpush3.msra.mxu0 %v39_v57  ;;  %v412_v12 = vld [vmem:[%s840_s4] ss:$0 sm:$0xff] }
  0x25   :  { %438 = vmatprep.subr.mxu0 %v54_v58  ;;  %v411_v34 = vld [vmem:[%s838_s2] ss:$0 sm:$0xff]  ;;  %s493_s2 = scalar_lea.vmem %s400_s12, 128 }
  0x26   :  { %439 = vmatpush3.msra.mxu0 %v38_v59  ;;  %v270_v35 = vld [vmem:[%s843_s7] sm:$0xff]  ;;  %p494_p0 = scmp.ne.s32.totalorder %s400_s12, %s493_s2  ;;  %p499_p2 = scmp.lt.s32.totalorder %s493_s2, %s493_s2 }
  0x27   :  { %440 = vmatprep.subr.mxu0 %v53_v60 }
  0x28   :  { %441 = vmatpush3.msra.mxu0 %v37_v61  ;;  %p500_p3 = por %p499_p2, %p498_p1 }
  0x29   :  { %442 = vmatprep.subr.mxu0 %v52_v62 }
  0x2a   :  { %443 = vmatpush3.msra.mxu0 %v36_v63  ;;  %p501_p4 = pnand %p500_p3, %p494_p0 }
  0x2b   :  { %444 = vmatprep.subr.mxu0 %v51_v0 }
  0x2c   :  { %445 = vmatpush3.msra.mxu0 %v35_v1 }
  0x2d   :  { %139 = vmatmul.mubr.f32.vlgmr.msra.gmra.mxu0 %v33_v54  ;;  %321 = vmatprep.subr.mxu0 %v280_v2 }
  0x2e   :  { %322 = vmatpush1.msra.mxu0 %v279_v3  ;;  %361 = vmatprep.mubr.f32.mxu0 %v537_v10 }
  0x2f   :  { %323 = vmatprep.subr.mxu0 %v278_v4 }
  0x30   :  { %324 = vmatpush1.msra.mxu0 %v277_v5 }
  0x31   :  { %325 = vmatprep.subr.mxu0 %v276_v6 }
  0x32   :  { %326 = vmatpush1.msra.mxu0 %v275_v7 }
  0x33   :  { %327 = vmatprep.subr.mxu0 %v274_v8 }
  0x34   :  { %328 = vmatpush1.msra.mxu0 %v273_v9 }
  0xe2   :  { %v481_v11 = vpop.f32.mrf.mxu1 }
  0xe4   :  { %v482_v13 = vpop.f32.mrf.mxu1 }
  0xe5   :  { %v483_v14 = vadd.f32 %v482_v13, %v481_v11 }
  0xe7   :  { %v250_v15 = vadd.f32 %v483_v14, %v412_v12 }
  0xe9   :  { %v253_v16 = vadd.f32 0.25, %v250_v15 }
  0xeb   :  { %v255_v17 = vand.u32 2147483647, %v253_v16  ;;  %v254_v30 = vmax.f32 %v253_v16, 0.0 }
  0xed   :  { %v256_v18 = vsub.f32 0.0, %v255_v17  ;;  %v446_v23 = vpop.f32.mrf.mxu0 }
  0xef   :  { %v257_v19 = vmul.f32 1.442695, %v256_v18  ;;  %v447_v27 = vpop.f32.mrf.mxu0 }
  0xf0   :  { %v448_v32 = vadd.f32 %v447_v27, %v446_v23 }
  0xf1   :  { %489 = vpow2.f32 %v257_v19 }
  0xf2   :  { %v141_v37 = vadd.f32 %v448_v32, %v411_v34 }
  0xfe   :  { %v490_v20 = vpop.eup %489 }
  0xff   :  { %v259_v21 = vadd.f32 1.0, %v490_v20  ;;  %v262_v22 = vmul.f32 -0.5, %v490_v20  ;;  %v265_v25 = vand.u32 2147483647, %v490_v20 }
 0x101   :  { %491 = vlog2.f32 %v259_v21  ;;  %v263_v24 = vadd.f32 1.0, %v262_v22  ;;  %vm266_vm0 = vcmp.lt.f32.partialorder %v265_v25, 0.0004427343 }
 0x103   :  { %v264_v29 = vmul.f32 %v490_v20, %v263_v24 }
 0x10e   :  { %v492_v26 = vpop.eup %491 }
 0x10f   :  { %v261_v28 = vmul.f32 0.6931472, %v492_v26 }
 0x111   :  { %v267_v31 = vsel %vm266_vm0, %v264_v29, %v261_v28 }
 0x112   :  { %v268_v33 = vadd.f32 %v267_v31, %v254_v30 }
 0x114   :  { %v269_v36 = vmax.f32 %v268_v33, 0.001 }
 0x116   :  { %371 = vrot.lane.b32.xlu0 %v269_v36, %s538_s30  ;;  %v271_v38 = vmul.f32 %v270_v35, %v269_v36 }
 0x118   :  { %v272_v39 = vadd.f32 %v271_v38, %v141_v37 }
 0x11a   :  { %374 = vrot.lane.b32.xlu0 %v272_v39, %s539_s10  ;;  %413 = vmatmul.mubr.msk.f32.vlgmr.msra.gmra.mxu0 %vm293_vm1, %v272_v39 }
 0x188   :  { %v372_v40 = vpop.permute.xlu0 %371 }
 0x189   :  { %v377_v41 = vsel %vm293_vm1, %v141_v37, %v372_v40 }
 0x18c   :  { %v375_v42 = vpop.permute.xlu0 %374 }
 0x18d   :  { %v379_v43 = vsel %vm378_vm2, %v377_v41, %v375_v42 }
 0x18e   :  { %v381_v44 = vsel %vm380_vm3, %v379_v43, 0.0 }
 0x18f   :  { %382 = vst [vmem:[#allocation4] sm:$0xff] %v381_v44 }
 0x190   :  { %504 = shalt.err (!%p501_p4)
}
 0x191   :  { %402 = dma.vmem_to_hbm [thread:$0]  %s400_s12, 128, %s845_s9, [#allocation5]   ;;  %v283_v45 = vlaneseq  ;;  %v281_v48 = vld [vmem:[%s842_s6] sm:$0x3] }
 0x192   :  { %s541_s16 = smov [#allocation2]  }
 0x193   :  { %v284_v46 = vshrl.u32 %v283_v45, 7  ;;  %s389_s17 = sshll.u32 %s541_s16, 4  ;;  %s390_s17 = int_to_ptr.vmem [resolvable:$true] %s389_s17 }
 0x194   :  { %s513_s9 = scalar_lea.vmem %s390_s17, 256  ;;  %p518_p6 = scmp.lt.s32.totalorder %s390_s17, %s390_s17 }
 0x195   :  { %v285_v47 = vsub.s32 0, %v284_v46  ;;  %v289_v49 = vsub.s32 1, %v284_v46  ;;  %p514_p5 = scmp.ne.s32.totalorder %s390_s17, %s513_s9  ;;  %p519_p7 = scmp.lt.s32.totalorder %s513_s9, %s513_s9 }
 0x197   :  { %v286_v50 = vrot.slane %v281_v48, %v285_v47  ;;  %v290_v51 = vrot.slane %v281_v48, %v289_v49  ;;  %p520_p8 = por %p519_p7, %p518_p6 }
 0x199   :  { %p521_p9 = pnand %p520_p8, %p514_p5 }
 0x1da   :  { %v363_v52 = vpop.f32.mrf.mxu0 }
 0x1db   :  { %v364_v53 = vadd.f32 %v363_v52, %v286_v50 }
 0x1dc   :  { %v365_v54 = vpop.f32.mrf.mxu0 }
 0x1dd   :  { %368 = vst [vmem:[#allocation2] sm:$0xff] %v364_v53  ;;  %v366_v55 = vadd.f32 %v365_v54, %v290_v51 }
 0x1df   :  { %369 = vst [vmem:[#allocation2 + $0x8] sm:$0xff] %v366_v55 }
 0x1e0   :  { %524 = shalt.err (!%p521_p9)
}
 0x1e1   :  { %392 = dma.vmem_to_hbm [thread:$0]  %s390_s17, 256, %s844_s8, [#allocation3]  }
 0x1e2   :  { %533 = dma.done.wait [#allocation3], 256  }
 0x1e3   :  { %534 = vsyncadd [#allocation3], 4294967040 }
 0x1e4   :  { %535 = dma.done.wait [#allocation5], 128  }
 0x1e5   :  { %536 = vsyncadd [#allocation5], 4294967168 }
 0x1e6   :  { %409 = vsyncpa [#allocation3], 1 }
 0x1e7   :  { %410 = vsyncpa [#allocation5], 1 }

</bundles_post_ra>
